<compile_context>
chip_gen: v6e
topology: v6e:2x2x1
jax: 0.10.0
libtpu: 0.0.40
codegen_flags: <defaults>
</compile_context>

<pallas_src>
import functools

import numpy as np
import jax
import jax.numpy as jnp
from jax import lax
from jax.experimental import pallas as pl
from jax.experimental.pallas import tpu as pltpu

HEAD_LANE = 128  # per-branch (theta / alpha) lane padding of the fused head output


# ---------------------------------------------------------------- chip tuning
def _tpu_tuning():
    """(tile_rows, vmem_limit_bytes, parallel_cores) per TPU generation."""
    try:
        kind = jax.devices()[0].device_kind.lower()
    except Exception:
        kind = ""
    if "v7" in kind or "7x" in kind:
        # 64 MiB per-TC VMEM, 2 TensorCores: smaller scoped limit, split small grids.
        return 512, 48 * 1024 * 1024, 2
    if "v5" in kind or "v6" in kind:
        # 128 MiB VMEM parts: bigger tiles amortize per-grid-step overhead.
        return 1024, 64 * 1024 * 1024, 1
    return 512, 32 * 1024 * 1024, 1


TILE_ROWS, VMEM_LIMIT_BYTES, NUM_PARALLEL_CORES = _tpu_tuning()


# ------------------------------------------------------------------ helpers
def _round_up(x, m):
    return (x + m - 1) // m * m


def _cdiv(a, b):
    return -(-a // b)


def _nbytes(a):
    return int(np.prod(a.shape)) * jnp.dtype(a.dtype).itemsize


_WEIGHT_PIPELINE_MODE = ["unprobed"]


def _weight_pipeline_mode():
    """pl.Buffered(1) for constant-index weight operands (halves their VMEM) if supported."""
    if _WEIGHT_PIPELINE_MODE[0] == "unprobed":
        try:
            def _probe(x_ref, w_ref, o_ref):
                o_ref[...] = x_ref[...] + w_ref[...]

            x = jnp.zeros((16, 128), jnp.float32)
            w = jnp.zeros((8, 128), jnp.float32)
            out = pl.pallas_call(
                _probe,
                out_shape=jax.ShapeDtypeStruct((16, 128), jnp.float32),
                grid=(2,),
                in_specs=[pl.BlockSpec((8, 128), lambda i: (i, 0)),
                          pl.BlockSpec((8, 128), lambda i: (0, 0),
                                       pipeline_mode=pl.Buffered(1))],
                out_specs=pl.BlockSpec((8, 128), lambda i: (i, 0)),
                compiler_params=pltpu.CompilerParams(
                    dimension_semantics=("parallel",)),
            )(x, w)
            jax.block_until_ready(out)
            _WEIGHT_PIPELINE_MODE[0] = pl.Buffered(1)
        except Exception:
            _WEIGHT_PIPELINE_MODE[0] = None  # fall back to default double-buffering
    return _WEIGHT_PIPELINE_MODE[0]


def _fixed_spec(a):
    """Weights/biases: fully VMEM-resident across the row grid (single-buffered if possible)."""
    assert a.ndim == 2
    mode = _weight_pipeline_mode()
    if mode is not None:
        return pl.BlockSpec(a.shape, lambda i: (0, 0), pipeline_mode=mode)
    return pl.BlockSpec(a.shape, lambda i: (0, 0))


def _plan_rows(n_rows, stream_row_bytes=0, fixed_bytes=0):
    """Pick (padded_rows, row_tile) for a 1-D row grid.

    * tiles are 8-aligned and at most TILE_ROWS;
    * on multi-TensorCore parts small problems are split so the 'parallel'
      axis has >= NUM_PARALLEL_CORES programs;
    * the tile is capped so double-buffered streamed rows + (conservatively
      double-buffered) weights fit the scoped VMEM limit (matters for the
      (rows, N_max) decoder input on 64 MiB parts).
    """
    rows8 = _round_up(max(n_rows, 8), 8)
    if NUM_PARALLEL_CORES > 1 and rows8 <= TILE_ROWS:
        tile = max(8, _round_up(_cdiv(rows8, NUM_PARALLEL_CORES), 8))
    else:
        tile = min(TILE_ROWS, rows8)
    if stream_row_bytes > 0:
        budget = VMEM_LIMIT_BYTES - 2 * fixed_bytes - (2 << 20)
        cap = budget // (2 * stream_row_bytes)
        if cap >= 8:
            tile = min(tile, cap // 8 * 8)
    rows_p = _round_up(rows8, tile)
    return rows_p, tile


def _pad_rows(a, rows_p):
    if a.shape[0] == rows_p:
        return a
    pad = ((0, rows_p - a.shape[0]),) + ((0, 0),) * (a.ndim - 1)
    return jnp.pad(a, pad)


def _row_tiled_call(kernel, tiled_args, fixed_args, out_feat, out_dtype, *,
                    tile, io_alias=None):
    """Launch `kernel` over a 1-D row grid.

    tiled_args: (rows_p, F_i) arrays with rows_p % tile == 0 (row-streamed,
                double-buffered).  No per-call pad/slice is done here.
    fixed_args: weights/biases, fully VMEM-resident across the grid.
    Returns a (rows_p, out_feat) array of dtype out_dtype.
    """
    rows_p = tiled_args[0].shape[0]
    assert rows_p % tile == 0, (rows_p, tile)
    for a in tiled_args:
        assert a.shape[0] == rows_p
    grid = rows_p // tile

    in_specs = [pl.BlockSpec((tile, a.shape[1]), lambda i: (i, 0)) for a in tiled_args]
    in_specs += [_fixed_spec(a) for a in fixed_args]
    extra = {}
    if io_alias:
        extra["input_output_aliases"] = io_alias

    return pl.pallas_call(
        kernel,
        out_shape=jax.ShapeDtypeStruct((rows_p, out_feat), out_dtype),
        grid=(grid,),
        in_specs=in_specs,
        out_specs=pl.BlockSpec((tile, out_feat), lambda i: (i, 0)),
        compiler_params=pltpu.CompilerParams(
            dimension_semantics=("parallel",),
            vmem_limit_bytes=VMEM_LIMIT_BYTES,
        ),
        **extra,
    )(*tiled_args, *fixed_args)


# ------------------------------------------------------------------ kernels
def linear_kernel(x_ref, w_ref, b_ref, o_ref):
    # y = x @ W + b  (bf16 MXU operands, f32 accumulate, output in o_ref dtype)
    x = x_ref[...].astype(jnp.bfloat16)
    y = jnp.dot(x, w_ref[...], preferred_element_type=jnp.float32) + b_ref[...]
    o_ref[...] = y.astype(o_ref.dtype)


def edge_msg_kernel(sd_ref, eb_ref, w1_ref, w2a_ref, b2a_ref, w2m_ref, b2m_ref,
                    o_ref, *, att_hidden):
    # Fused msg-MLP + attention head for one propagation step.
    #   edge_input = [state_diff | att_edge_feat]
    #   eb_ref already holds att_edge_feat @ W1[H:, :] + b1 (constant per layer, bf16).
    #   Column layout of the fused first layer: [att branch (A) | msg branch (H)].
    sd = sd_ref[...]                                          # bf16 stream
    h = jnp.dot(sd, w1_ref[...], preferred_element_type=jnp.float32) + eb_ref[...]
    h = jnp.maximum(h, 0.0)
    h_a = h[:, :att_hidden].astype(jnp.bfloat16)              # lane-aligned (A = 128)
    h_m = h[:, att_hidden:].astype(jnp.bfloat16)
    att = jax.nn.sigmoid(
        jnp.dot(h_a, w2a_ref[...], preferred_element_type=jnp.float32) + b2a_ref[...])
    msg = jnp.dot(h_m, w2m_ref[...], preferred_element_type=jnp.float32) + b2m_ref[...]
    o_ref[...] = (msg * att).astype(o_ref.dtype)


def gru_kernel(x_ref, h_ref, wih_ref, whh_ref, bih_ref, bhh_ref, o_ref, *, hidden):
    # PyTorch nn.GRUCell semantics, concatenated gate weights (order r, z, n).
    # Hidden state stays f32; MXU operands are bf16 with f32 accumulation.
    x = x_ref[...].astype(jnp.bfloat16)
    h = h_ref[...]
    gi = jnp.dot(x, wih_ref[...], preferred_element_type=jnp.float32) + bih_ref[...]
    gh = jnp.dot(h.astype(jnp.bfloat16), whh_ref[...],
                 preferred_element_type=jnp.float32) + bhh_ref[...]
    r = jax.nn.sigmoid(gi[:, :hidden] + gh[:, :hidden])
    z = jax.nn.sigmoid(gi[:, hidden:2 * hidden] + gh[:, hidden:2 * hidden])
    n = jnp.tanh(gi[:, 2 * hidden:] + r * gh[:, 2 * hidden:])
    o_ref[...] = (1.0 - z) * n + z * h


def head_bce_kernel(diff_ref, label_ref, w1, b1, w2, b2, w3, b3, o_ref,
                    *, theta_lanes, pos_weight):
    # Fused output_theta / output_alpha 3-layer MLPs (block-diagonal layer-2/3)
    # + BCEWithLogitsLoss(pos_weight, reduction='none') on the theta logits.
    # Output columns (lane-dense, 2 * theta_lanes wide):
    #   [:theta_lanes]  adj_loss   (first k_theta columns valid)
    #   [theta_lanes:]  log_alpha  (first k_alpha columns valid)
    x = diff_ref[...]                                         # bf16 stream
    h = jnp.maximum(
        jnp.dot(x, w1[...], preferred_element_type=jnp.float32) + b1[...], 0.0)
    h = jnp.maximum(
        jnp.dot(h.astype(jnp.bfloat16), w2[...],
                preferred_element_type=jnp.float32) + b2[...], 0.0)
    out = jnp.dot(h.astype(jnp.bfloat16), w3[...],
                  preferred_element_type=jnp.float32) + b3[...]          # (T, 2L)
    theta = out[:, :theta_lanes]                              # lane-aligned slices
    alpha = out[:, theta_lanes:]
    y = label_ref[...]                                        # (T, 1)
    sp_neg = jnp.maximum(-theta, 0.0) + jnp.log1p(jnp.exp(-jnp.abs(theta)))  # softplus(-x)
    bce = (1.0 - y) * theta + (pos_weight * y + (1.0 - y)) * sp_neg
    o_ref[...] = jnp.concatenate([bce, alpha], axis=1)


# ------------------------------------------------------------------ parameters
def init_params(key, n_max, hidden, att_edge_dim, num_mix, num_layers,
                att_hidden_dim=128, output_dim=1):
    keys = iter(jax.random.split(key, 256))

    def lin(din, dout, scale=0.1):
        w = jax.random.normal(next(keys), (din, dout), jnp.float32) * scale
        b = jax.random.normal(next(keys), (1, dout), jnp.float32) * scale
        return (w, b)

    edge_in = hidden + 2 * att_edge_dim
    params = {
        "dec": lin(n_max, hidden),
        "layers": [],
        "theta": [lin(hidden, hidden), lin(hidden, hidden),
                  lin(hidden, output_dim * num_mix)],
        "alpha": [lin(hidden, hidden), lin(hidden, hidden), lin(hidden, num_mix)],
    }
    for _ in range(num_layers):
        params["layers"].append({
            "msg1": lin(edge_in, hidden),
            "msg2": lin(hidden, hidden),
            "att1": lin(edge_in, att_hidden_dim),
            "att2": lin(att_hidden_dim, hidden),
            # GRUCell per-gate (H x H) weights (gate order r, z, n)
            "w_ir": lin(hidden, hidden), "w_iz": lin(hidden, hidden),
            "w_in": lin(hidden, hidden),
            "w_hr": lin(hidden, hidden), "w_hz": lin(hidden, hidden),
            "w_hn": lin(hidden, hidden),
        })
    return params


def prepare_params(params, hidden):
    """Fuse/concatenate weights once and pre-cast matmul operands to bf16."""
    bf = lambda a: a.astype(jnp.bfloat16)
    H = hidden
    prep = {"dec_w": bf(params["dec"][0]), "dec_b": params["dec"][1], "layers": []}

    for lp in params["layers"]:
        wm1, bm1 = lp["msg1"]
        wm2, bm2 = lp["msg2"]
        wa1, ba1 = lp["att1"]
        wa2, ba2 = lp["att2"]
        # fused first layer, column order [att | msg]; row split state_diff / att_edge
        w1 = jnp.concatenate([wa1, wm1], axis=1)            # (H + 2*att_edge_dim, A+H)
        b1 = jnp.concatenate([ba1, bm1], axis=1)            # (1, A+H)
        prep["layers"].append({
            "w1_sd": bf(w1[:H]),                            # (H, A+H)
            "w1_att": bf(w1[H:]),                           # (2*att_edge_dim, A+H)
            "b1": b1,
            "w2a": bf(wa2), "b2a": ba2,                     # (A, H)
            "w2m": bf(wm2), "b2m": bm2,                     # (H, H)
            "w_ih": bf(jnp.concatenate(
                [lp["w_ir"][0], lp["w_iz"][0], lp["w_in"][0]], axis=1)),   # (H, 3H)
            "w_hh": bf(jnp.concatenate(
                [lp["w_hr"][0], lp["w_hz"][0], lp["w_hn"][0]], axis=1)),   # (H, 3H)
            "b_ih": jnp.concatenate(
                [lp["w_ir"][1], lp["w_iz"][1], lp["w_in"][1]], axis=1),
            "b_hh": jnp.concatenate(
                [lp["w_hr"][1], lp["w_hz"][1], lp["w_hn"][1]], axis=1),
        })

    # fused output heads: theta & alpha share the diff input; layers 2/3 block-diag,
    # layer-3 columns padded so each branch fills a full 128-lane block.
    (wt1, bt1), (wt2, bt2), (wt3, bt3) = params["theta"]
    (wl1, bl1), (wl2, bl2), (wl3, bl3) = params["alpha"]
    kt, ka = wt3.shape[1], wl3.shape[1]
    assert kt <= HEAD_LANE and ka <= HEAD_LANE, "mixture dim must fit one lane block"
    zH = jnp.zeros((H, H), jnp.float32)
    zL = jnp.zeros((H, HEAD_LANE), jnp.float32)
    prep["head_w1"] = bf(jnp.concatenate([wt1, wl1], axis=1))              # (H, 2H)
    prep["head_b1"] = jnp.concatenate([bt1, bl1], axis=1)
    prep["head_w2"] = bf(jnp.concatenate(
        [jnp.concatenate([wt2, zH], axis=1),
         jnp.concatenate([zH, wl2], axis=1)], axis=0))                     # (2H, 2H)
    prep["head_b2"] = jnp.concatenate([bt2, bl2], axis=1)
    w3t = jnp.pad(wt3, ((0, 0), (0, HEAD_LANE - kt)))
    w3a = jnp.pad(wl3, ((0, 0), (0, HEAD_LANE - ka)))
    prep["head_w3"] = bf(jnp.concatenate(
        [jnp.concatenate([w3t, zL], axis=1),
         jnp.concatenate([zL, w3a], axis=1)], axis=0))                     # (2H, 2*128)
    prep["head_b3"] = jnp.concatenate(
        [jnp.pad(bt3, ((0, 0), (0, HEAD_LANE - kt))),
         jnp.pad(bl3, ((0, 0), (0, HEAD_LANE - ka)))], axis=1)             # (1, 2*128)
    prep["k_theta"], prep["k_alpha"] = kt, ka
    return prep


# ------------------------------------------------------------------ loss
def mixture_bernoulli_loss(adj_loss, log_alpha, subgraph_idx, subgraph_idx_base,
                           num_canonical_order):
    """adj_loss, log_alpha: (E, K) as produced by head_bce_kernel (real columns only)."""
    C = num_canonical_order
    sib = np.asarray(subgraph_idx_base)
    num_subgraph = int(sib[-1])
    B = sib.shape[0] - 1
    E = adj_loss.shape[0]
    assert E % C == 0

    const = jax.ops.segment_sum(jnp.ones((E,), jnp.float32), subgraph_idx,
                                num_segments=num_subgraph)
    reduce_adj_loss = jax.ops.segment_sum(adj_loss, subgraph_idx,
                                          num_segments=num_subgraph)
    reduce_log_alpha = jax.ops.segment_sum(log_alpha, subgraph_idx,
                                           num_segments=num_subgraph) / const[:, None]
    reduce_log_alpha = jax.nn.log_softmax(reduce_log_alpha, axis=-1)

    log_prob = jax.scipy.special.logsumexp(-reduce_adj_loss + reduce_log_alpha, axis=1)

    bc_size = (sib[1:] - sib[:-1]) // C                 # (B,)
    bc_size = np.repeat(bc_size, C)                     # (B*C,)
    bc_idx = jnp.asarray(np.repeat(np.arange(B * C), bc_size).astype(np.int32))

    bc_log_prob = jax.ops.segment_sum(log_prob, bc_idx, num_segments=B * C)
    bc_const = jax.ops.segment_sum(const, bc_idx, num_segments=B * C)
    bc_loss = (bc_log_prob / bc_const).reshape(B, C)

    # sum_order_log_prob=False (default in forward), reduction='mean'
    b_loss = -jax.scipy.special.logsumexp(bc_loss, axis=1)
    return jnp.mean(b_loss)


# ------------------------------------------------------------------ forward
def gran_forward(params, A_pad, edges, node_idx_gnn, node_idx_feat, att_idx,
                 subgraph_idx, subgraph_idx_base, label, *,
                 num_canonical_order, num_gnn_layers, num_gnn_prop,
                 att_edge_dim, edge_weight, att_hidden_dim=128):
    B, C, N_max, _ = A_pad.shape
    H = params["dec"][0].shape[1]
    Ah = att_hidden_dim
    prep = prepare_params(params, H)
    kt, ka = prep["k_theta"], prep["k_alpha"]

    # -------- _inference: decoder_input linear (bf16 streamed 0/1 input) --------
    R_dec = B * C * N_max
    A_flat = A_pad.reshape(R_dec, N_max).astype(jnp.bfloat16)      # exact 0/1 values
    rows_dec, tile_dec = _plan_rows(
        R_dec,
        stream_row_bytes=N_max * 2 + H * 4,
        fixed_bytes=_nbytes(prep["dec_w"]) + _nbytes(prep["dec_b"]))
    node_feat = _row_tiled_call(
        linear_kernel, [_pad_rows(A_flat, rows_dec)],
        [prep["dec_w"], prep["dec_b"]], H, jnp.float32, tile=tile_dec)
    # F.pad(node_feat, (0,0,1,0)): row 0 is the all-zero "new node" feature.
    # Trailing pad rows are never gathered (node_idx_feat <= R_dec), so no slice.
    node_feat = jnp.concatenate([jnp.zeros((1, H), jnp.float32), node_feat], axis=0)

    # -------- GNN graph: pad everything ONCE (no per-step pad/slice churn) --------
    N = node_idx_feat.shape[0]
    M = edges.shape[0]
    F2 = 2 * att_edge_dim

    lp0 = prep["layers"][0]
    msg_fixed = sum(_nbytes(lp0[k]) for k in ("w1_sd", "w2a", "b2a", "w2m", "b2m"))
    bias_fixed = _nbytes(lp0["w1_att"]) + _nbytes(lp0["b1"])
    gru_fixed = sum(_nbytes(lp0[k]) for k in ("w_ih", "w_hh", "b_ih", "b_hh"))

    rows_M, tile_M = _plan_rows(
        M,
        stream_row_bytes=max(H * 2 + (Ah + H) * 2 + H * 2,      # msg kernel streams
                             F2 * 2 + (Ah + H) * 2),            # edge-bias kernel streams
        fixed_bytes=max(msg_fixed, bias_fixed))
    rows_N, tile_N = _plan_rows(
        N, stream_row_bytes=3 * H * 4, fixed_bytes=gru_fixed)

    state = _pad_rows(node_feat[node_idx_feat], rows_N)          # (N_p, H) f32 hidden
    e0 = _pad_rows(edges[:, 0], rows_M)                          # gather idx (pad -> 0)
    e1 = _pad_rows(edges[:, 1], rows_M)
    # scatter targets: pad edges go out of range and are dropped (FILL_OR_DROP)
    e1_scatter = jnp.pad(edges[:, 1], (0, rows_M - M), constant_values=rows_N)

    att_idx_f = att_idx.reshape(-1)
    att_edge_feat = (
        jax.nn.one_hot(att_idx_f[edges[:, 0]], F2, dtype=jnp.bfloat16)
        + jax.nn.one_hot(att_idx_f[edges[:, 1]] + att_edge_dim, F2, dtype=jnp.bfloat16))
    att_edge_feat = _pad_rows(att_edge_feat, rows_M)             # (M_p, 2*att_edge_dim)

    for li in range(num_gnn_layers):
        if li > 0:
            state = jax.nn.relu(state)
        lp = prep["layers"][li]
        # attention-edge contribution to the fused first layer: constant per layer
        edge_bias = _row_tiled_call(
            linear_kernel, [att_edge_feat], [lp["w1_att"], lp["b1"]],
            Ah + H, jnp.bfloat16, tile=tile_M)                   # (M_p, A+H) bf16
        for _ in range(num_gnn_prop):
            state_diff = (jnp.take(state, e0, axis=0)
                          - jnp.take(state, e1, axis=0)).astype(jnp.bfloat16)
            msg = _row_tiled_call(
                functools.partial(edge_msg_kernel, att_hidden=Ah),
                [state_diff, edge_bias],
                [lp["w1_sd"], lp["w2a"], lp["b2a"], lp["w2m"], lp["b2m"]],
                H, jnp.bfloat16, tile=tile_M)                    # (M_p, H) bf16
            # f32 scatter-add accumulation; pad-edge rows (idx == rows_N) are dropped.
            state_msg = jax.ops.segment_sum(
                msg.astype(jnp.float32), e1_scatter, num_segments=rows_N,
                mode=lax.GatherScatterMode.FILL_OR_DROP)
            state = _row_tiled_call(
                functools.partial(gru_kernel, hidden=H),
                [state_msg, state],
                [lp["w_ih"], lp["w_hh"], lp["b_ih"], lp["b_hh"]],
                H, jnp.float32, tile=tile_N,
                io_alias={1: 0})                                 # h aliased to output

    # -------- output heads (theta + alpha) fused with BCE, lane-dense output --------
    E = node_idx_gnn.shape[0]
    head_fixed = sum(_nbytes(prep[k]) for k in
                     ("head_w1", "head_b1", "head_w2", "head_b2", "head_w3", "head_b3"))
    rows_E, tile_E = _plan_rows(
        E, stream_row_bytes=H * 2 + 4 + 2 * HEAD_LANE * 4, fixed_bytes=head_fixed)
    diff = (jnp.take(state, node_idx_gnn[:, 0], axis=0)
            - jnp.take(state, node_idx_gnn[:, 1], axis=0)).astype(jnp.bfloat16)
    diff = _pad_rows(diff, rows_E)
    label2 = _pad_rows(label.reshape(E, 1).astype(jnp.float32), rows_E)

    packed = _row_tiled_call(
        functools.partial(head_bce_kernel, theta_lanes=HEAD_LANE,
                          pos_weight=float(edge_weight)),
        [diff, label2],
        [prep["head_w1"], prep["head_b1"], prep["head_w2"], prep["head_b2"],
         prep["head_w3"], prep["head_b3"]],
        2 * HEAD_LANE, jnp.float32, tile=tile_E)                 # (E_p, 256)

    # output_dim == 1, so the reference .view(-1, num_mix_component) is a no-op here.
    adj_loss = packed[:E, :kt]                                   # BCE per mixture comp.
    log_alpha = packed[:E, HEAD_LANE:HEAD_LANE + ka]

    # -------- mixture Bernoulli loss --------
    return mixture_bernoulli_loss(adj_loss, log_alpha, subgraph_idx,
                                  subgraph_idx_base, num_canonical_order)


# ------------------------------------------------------------------ main
if __name__ == "__main__":
    key = jax.random.PRNGKey(0)
    # small synthetic config
    B, C, N_max, H = 2, 1, 16, 32
    att_edge_dim = 64
    num_mix = 4
    num_gnn_layers, num_gnn_prop = 2, 2
    block_size = 4
    edge_weight = 1.0

    N_gnn = 24   # nodes in the merged GNN graph
    M = 64       # GNN edges
    E = 32       # augmented edges (E % C == 0)

    k_param, k1, k2, k3, k4, k5, k6 = jax.random.split(key, 7)
    params = init_params(k_param, N_max, H, att_edge_dim, num_mix, num_gnn_layers)

    A_pad = jax.random.bernoulli(k1, 0.3, (B, C, N_max, N_max)).astype(jnp.float32)
    node_idx_feat = jax.random.randint(k2, (N_gnn,), 0, B * C * N_max + 1, jnp.int32)
    att_idx = jax.random.randint(k3, (N_gnn, 1), 0, block_size + 1, jnp.int32)
    edges = jax.random.randint(k4, (M, 2), 0, N_gnn, jnp.int32)
    node_idx_gnn = jax.random.randint(k5, (E, 2), 0, N_gnn, jnp.int32)
    label = jax.random.bernoulli(k6, 0.5, (E,)).astype(jnp.float32)

    # 3 subgraphs per batch element, each with >=1 edge
    subgraph_idx = jnp.asarray(np.concatenate([
        np.repeat([0, 1, 2], [6, 5, 5]),
        np.repeat([3, 4, 5], [6, 5, 5]),
    ]).astype(np.int32))
    subgraph_idx_base = np.array([0, 3, 6], dtype=np.int32)

    loss = gran_forward(
        params, A_pad, edges, node_idx_gnn, node_idx_feat, att_idx,
        subgraph_idx, subgraph_idx_base, label,
        num_canonical_order=C, num_gnn_layers=num_gnn_layers,
        num_gnn_prop=num_gnn_prop, att_edge_dim=att_edge_dim,
        edge_weight=edge_weight)
    jax.block_until_ready(loss)
    assert np.isfinite(float(loss))
    print("KERNEL_OK")
</pallas_src>

<mosaic_0001>
module attributes {stable_mosaic.version = 11 : i64} {
  func.func @_probe(%arg0: i32, %arg1: memref<8x128xf32, #tpu.memory_space<vmem>>, %arg2: memref<8x128xf32, #tpu.memory_space<vmem>>, %arg3: memref<8x128xf32, #tpu.memory_space<vmem>>) attributes {dimension_semantics = [#tpu.dimension_semantics<parallel>], iteration_bounds = array<i64: 2>, scalar_prefetch = 0 : i64, scratch_operands = 0 : i64, tpu.core_type = #tpu.core_type<tc>, window_params = [{transform_indices = @transform_0, window_bounds = array<i64: 8, 128>}, {pipeline_mode = #tpu.pipeline_mode<synchronous>, transform_indices = @transform_1, window_bounds = array<i64: 8, 128>}, {transform_indices = @transform_2, window_bounds = array<i64: 8, 128>}]} {
    %c0 = arith.constant 0 : index
    %c0_0 = arith.constant 0 : index
    %0 = vector.load %arg1[%c0, %c0_0] : memref<8x128xf32, #tpu.memory_space<vmem>>, vector<8x128xf32>
    %c0_1 = arith.constant 0 : index
    %c0_2 = arith.constant 0 : index
    %1 = vector.load %arg2[%c0_1, %c0_2] : memref<8x128xf32, #tpu.memory_space<vmem>>, vector<8x128xf32>
    %2 = arith.addf %0, %1 : vector<8x128xf32>
    %c0_3 = arith.constant 0 : index
    %c0_4 = arith.constant 0 : index
    %3 = vector.load %arg3[%c0_3, %c0_4] : memref<8x128xf32, #tpu.memory_space<vmem>>, vector<8x128xf32>
    tpu.vector_store %arg3[%c0_3, %c0_4], %2 {strides = array<i32>} : memref<8x128xf32, #tpu.memory_space<vmem>>, vector<8x128xf32>,
    return
  }
  func.func @transform_0(%arg0: i32) -> (i32, i32) {
    %c0_i32 = arith.constant 0 : i32
    %c0_i32_0 = arith.constant 0 : i32
    return %arg0, %c0_i32 : i32, i32
  }
  func.func @transform_1(%arg0: i32) -> (i32, i32) {
    %c0_i32 = arith.constant 0 : i32
    %c0_i32_0 = arith.constant 0 : i32
    %c0_i32_1 = arith.constant 0 : i32
    return %c0_i32, %c0_i32_0 : i32, i32
  }
  func.func @transform_2(%arg0: i32) -> (i32, i32) {
    %c0_i32 = arith.constant 0 : i32
    %c0_i32_0 = arith.constant 0 : i32
    return %arg0, %c0_i32 : i32, i32
  }
}

module attributes {stable_mosaic.version = 11 : i64} {
  func.func @linear_kernel(%arg0: i32, %arg1: memref<32x16xbf16, #tpu.memory_space<vmem>>, %arg2: memref<16x32xbf16, #tpu.memory_space<vmem>>, %arg3: memref<1x32xf32, #tpu.memory_space<vmem>>, %arg4: memref<32x32xf32, #tpu.memory_space<vmem>>) attributes {dimension_semantics = [#tpu.dimension_semantics<parallel>], iteration_bounds = array<i64: 1>, scalar_prefetch = 0 : i64, scratch_operands = 0 : i64, tpu.core_type = #tpu.core_type<tc>, window_params = [{transform_indices = @transform_0, window_bounds = array<i64: 32, 16>}, {pipeline_mode = #tpu.pipeline_mode<synchronous>, transform_indices = @transform_1, window_bounds = array<i64: 16, 32>}, {pipeline_mode = #tpu.pipeline_mode<synchronous>, transform_indices = @transform_2, window_bounds = array<i64: 1, 32>}, {transform_indices = @transform_3, window_bounds = array<i64: 32, 32>}]} {
    %c0 = arith.constant 0 : index
    %c0_0 = arith.constant 0 : index
    %0 = vector.load %arg1[%c0, %c0_0] : memref<32x16xbf16, #tpu.memory_space<vmem>>, vector<32x16xbf16>
    %c0_1 = arith.constant 0 : index
    %c0_2 = arith.constant 0 : index
    %1 = vector.load %arg2[%c0_1, %c0_2] : memref<16x32xbf16, #tpu.memory_space<vmem>>, vector<16x32xbf16>
    %cst = arith.constant dense<0.000000e+00> : vector<32x32xf32>
    %2 = tpu.matmul %0, %1, %cst {dimension_numbers = #tpu.dot_dimension_numbers<[1], [0], [0], [1], [0, 0, 1, 1], [], []>} : vector<32x16xbf16>, vector<16x32xbf16>, vector<32x32xf32> -> vector<32x32xf32>
    %c0_3 = arith.constant 0 : index
    %c0_4 = arith.constant 0 : index
    %3 = vector.load %arg3[%c0_3, %c0_4] : memref<1x32xf32, #tpu.memory_space<vmem>>, vector<1x32xf32>
    %4 = vector.broadcast %3 : vector<1x32xf32> to vector<32x32xf32>
    %5 = arith.addf %2, %4 : vector<32x32xf32>
    %c0_5 = arith.constant 0 : index
    %c0_6 = arith.constant 0 : index
    %6 = vector.load %arg4[%c0_5, %c0_6] : memref<32x32xf32, #tpu.memory_space<vmem>>, vector<32x32xf32>
    tpu.vector_store %arg4[%c0_5, %c0_6], %5 {strides = array<i32>} : memref<32x32xf32, #tpu.memory_space<vmem>>, vector<32x32xf32>,
    return
  }
  func.func @transform_0(%arg0: i32) -> (i32, i32) {
    %c0_i32 = arith.constant 0 : i32
    %c0_i32_0 = arith.constant 0 : i32
    return %arg0, %c0_i32 : i32, i32
  }
  func.func @transform_1(%arg0: i32) -> (i32, i32) {
    %c0_i32 = arith.constant 0 : i32
    %c0_i32_0 = arith.constant 0 : i32
    %c0_i32_1 = arith.constant 0 : i32
    return %c0_i32, %c0_i32_0 : i32, i32
  }
  func.func @transform_2(%arg0: i32) -> (i32, i32) {
    %c0_i32 = arith.constant 0 : i32
    %c0_i32_0 = arith.constant 0 : i32
    %c0_i32_1 = arith.constant 0 : i32
    return %c0_i32, %c0_i32_0 : i32, i32
  }
  func.func @transform_3(%arg0: i32) -> (i32, i32) {
    %c0_i32 = arith.constant 0 : i32
    %c0_i32_0 = arith.constant 0 : i32
    return %arg0, %c0_i32 : i32, i32
  }
}

</mosaic_0001>

<bundles_post_ra>
// kernel: tpu_custom_call.1
= control target key start
LH: loop header
LB: loop body
LE: loop exit
PB: predicated region body
PF: predicated region fallthrough
CT: control target
= control target key end

     0   :  { %7 = vsyncpa [#allocation3], 0  ;;  %s649_s0 = inlined_call_operand.hbm [shape: f32[16,128], index: 0, kind: input, shape index: {}]   ;;  %s650_s1 = inlined_call_operand.hbm [shape: f32[8,128], index: 1, kind: input, shape index: {}]   ;;  %s651_s2 = inlined_call_operand.hbm [shape: f32[16,128], index: 2, kind: output, shape index: {}]  }
   0x1   :  { %9 = vsyncpa [#allocation3 + $0x1], 0 }
   0x2   :  { %10 = vsyncpa [#allocation6], 0 }
   0x3   :  { %11 = vsyncpa [#allocation4], 0 }
   0x4   :  { %13 = vsyncpa [#allocation4 + $0x1], 0  ;;  %s483_s9 = smov 0   ;;  %s485_s10 = smov 0  }
   0x5   :  { %s487_s11 = smov 0   ;;  %s489_s12 = smov 0  }
   0x6 LB: > { %s504_s13 = sadd.s32 4294967295, %s463_s12   ;;  %s270_s14 = sadd.s32 4294967294, %s463_s12   ;;  %s463_s12 = sphi %s489_s12, %s674_s12   ;;  %s459_s11 = sphi %s487_s11, %s673_s11   ;;  %s455_s10 = sphi %s485_s10, %s672_s10   ;;  %s451_s9 = sphi %s483_s9, %s671_s9  }
   0x7   : > { %p39_p0 = scmp.ne.s32.totalorder %s455_s10, %s451_s9  ;;  %p652_p1 = scmp.eq.s32.totalorder %s504_s13, 0 }
   0x8   : > { %p90_p3 = scmp.eq.s32.totalorder %s270_s14, 1  ;;  %p271_p5 = scmp.ge.s32.totalorder %s463_s12, 1 }
   0x9   : > { %p513_p4 = por %p652_p1, %p39_p0  ;;  %p97_p7 = scmp.lt.s32.totalorder %s463_s12, 3 }
   0xa   : > { %p518_p6 = por %p90_p3, %p39_p0  ;;  %s465_s18 = smov [#allocation5]  }
   0xb   : > { %s656_s15 = scalar_select %p513_p4, 1, 0 }
   0xc   : > { %s657_s16 = scalar_select %p518_p6, 1, 0 }
   0xd   : > { %p523_p8 = pnand %p271_p5, %p97_p7  ;;  %s110_s19 = sshll.u32 %s465_s18, 4  ;;  %s111_s19 = int_to_ptr.vmem [resolvable:$true] %s110_s19 }
   0xe   : > { %s531_s20 = sadd.s32 1, %s463_s12   ;;  %s26_s24 = sadd.s32 1, %s459_s11 }
   0xf   : > { %s658_s17 = scalar_select %p523_p8, 1, 0 }
  0x10   : > { %p292_p10 = pneg %p523_p8  ;;  %s23_s22 = ssub.s32 %s463_s12, %s531_s20 }
  0x11   : > { %p541_p12 = scmp.eq.s32.totalorder %s23_s22, 0  ;;  %p33_p13 = scmp.ne.s32.totalorder %s459_s11, %s455_s10 }
  0x12   : > { %p535_p11 = pnand %p292_p10, %p652_p1  ;;  %s352_s25 = scalar_lea.vmem %s111_s19, 128 }
  0x13   : > { %p353_p3 = scmp.ne.s32.totalorder %s111_s19, %s352_s25  ;;  %p360_p9 = scmp.lt.s32.totalorder %s111_s19, %s111_s19 }
  0x14   : > { %p343_p0 = pneg %p535_p11  ;;  %p361_p2 = scmp.lt.s32.totalorder %s352_s25, %s352_s25 }
  0x16   : > { %p355_p5 = pnand %p353_p3, %p343_p0  ;;  %p362_p10 = por %p361_p2, %p360_p9 }
  0x18   : > { %p356_p7 = pneg %p355_p5 }
  0x1a   : > { %p363_p1 = pnand %p362_p10, %p356_p7 }
  0x1c   : > { %366 = shalt.err (!%p363_p1)
}
  0x1d   : > { %295 = dma.hbm_to_vmem [thread:$0]  (!%p535_p11), %s650_s1, 128, %s111_s19, [#allocation6]  }
  0x1e   : > { %s558_s28 = scalar_select %p541_p12, %s459_s11, %s26_s24  }
  0x1f   : > { %p34_p1 = scmp.eq.s32.totalorder %s463_s12, 0  ;;  %p661_p2 = scmp.eq.s32.totalorder %s504_s13, 1 }
  0x20   : > { %p305_p0 = scmp.lt.s32.totalorder %s463_s12, 2  ;;  %s121_s30 = sand.u32 1, %s459_s11  }
  0x21   : > { %p566_p9 = por %p661_p2, %p33_p13  ;;  %p35_p3 = por %p34_p1, %p33_p13 }
  0x22   : > { %s274_s3 = sshll.u32 %s121_s30, 3  ;;  %s275_s4 = sshll.u32 %s463_s12, 7 }
  0x23   : > { %s662_s29 = scalar_select %p566_p9, 1, 0 }
  0x24   : > { %s579_s7 = scalar_lea.hbm %s649_s0, %s275_s4  ;;  %s125_s8 = scalar_lea.vmem [#allocation2], %s274_s3 }
  0x25   : > { %s132_s14 = sshll.u32 %s125_s8, 4  ;;  %p581_p11 = pnand %p305_p0, %p35_p3  ;;  %s133_s14 = int_to_ptr.vmem [resolvable:$true] %s132_s14 }
  0x26   : > { %s122_s19 = scalar_lea.sflag [#allocation3], %s121_s30  ;;  %s367_s21 = scalar_lea.hbm %s579_s7, 128 }
  0x27   : > { %p368_p12 = scmp.ne.s32.totalorder %s579_s7, %s367_s21  ;;  %p369_p13 = pneg %p581_p11 }
  0x28   : > { %s372_s24 = scalar_lea.hbm %s649_s0, 256  ;;  %p373_p10 = scmp.lt.s32.totalorder %s579_s7, %s649_s0 }
  0x29   : > { %p370_p5 = pnand %p369_p13, %p368_p12  ;;  %p374_p1 = scmp.lt.s32.totalorder %s372_s24, %s367_s21 }
  0x2b   : > { %p371_p7 = pneg %p370_p5  ;;  %p375_p2 = por %p374_p1, %p373_p10 }
  0x2d   : > { %p376_p0 = pnand %p375_p2, %p371_p7 }
  0x2f   : > { %379 = shalt.err (!%p376_p0)
}
  0x30   : > { %s380_s27 = scalar_lea.vmem %s133_s14, 128  ;;  %s466_s30 = smov [#allocation2]  }
  0x31   : > { %p381_p3 = scmp.ne.s32.totalorder %s133_s14, %s380_s27  ;;  %s385_s3 = sshll.u32 %s466_s30, 4  ;;  %s386_s3 = int_to_ptr.vmem [resolvable:$false] %s385_s3 }
  0x32   : > { %s387_s4 = scalar_lea.vmem %s386_s3, 256  ;;  %p388_p12 = scmp.lt.s32.totalorder %s133_s14, %s386_s3 }
  0x33   : > { %p383_p6 = pnand %p381_p3, %p369_p13  ;;  %p389_p5 = scmp.lt.s32.totalorder %s387_s4, %s380_s27 }
  0x35   : > { %p384_p9 = pneg %p383_p6  ;;  %p390_p4 = por %p389_p5, %p388_p12 }
  0x37   : > { %p391_p8 = pnand %p390_p4, %p384_p9 }
  0x39   : > { %394 = shalt.err (!%p391_p8)
}
  0x3a   : > { %299 = dma.hbm_to_vmem [thread:$0]  (!%p581_p11), %s579_s7, 128, %s133_s14, %s122_s19  }
  0x3b   : > { %p664_p7 = scmp.ne.s32.totalorder %s658_s17, 0 }
  0x3c   : > { %s602_s5 = sand.u32 (!%p664_p7), 1, %s455_s10   ;;  %p665_p6 = scmp.ne.s32.totalorder (!%p664_p7), %s656_s15, 0 }
  0x3d   : > { %141 = sbr.rel (%p664_p7) target bundleno = 95 (0x5f), region = 28  ;;  %s277_s6 = sshll.u32 (!%p664_p7), %s602_s5, 3 }
  0x3e   : > { %s144_s8 = scalar_lea.sflag (!%p664_p7), [#allocation3], %s602_s5  ;;  %s147_s21 = scalar_lea.vmem (!%p664_p7), [#allocation2], %s277_s6 }
  0x42   : > { %438 = dma.done.wait (%p665_p6), %s144_s8, 128  }
  0x43   : > { %440 = vsyncadd (%p665_p6), %s144_s8, 4294967168  ;;  %p666_p4 = scmp.eq.s32.totalorder %s504_s13, 0 }
  0x45   : > { %442 = dma.done.wait (%p666_p4), [#allocation6], 128   ;;  %p667_p8 = pmov %p666_p4 }
  0x46   : > { %s171_s17 = scalar_lea.vmem [#allocation7], %s277_s6  ;;  %s281_s14 = sshll.u32 %s504_s13, 7  ;;  %v172_v0 = vld [vmem:[%s147_s21] sm:$0xff]  ;;  %v173_v1 = vld [vmem:[#allocation5] sm:$0xff] }
  0x47   : > { %444 = vsyncadd (%p667_p8), [#allocation6], 4294967168  ;;  %s190_s7 = sshll.u32 %s171_s17, 4  ;;  %v174_v2 = vadd.f32 %v173_v1, %v172_v0  ;;  %s188_s15 = scalar_lea.hbm %s651_s2, %s281_s14  ;;  %s191_s7 = int_to_ptr.vmem [resolvable:$true] %s190_s7 }
  0x48   : > { %s177_s22 = scalar_lea.sflag [#allocation4], %s602_s5  ;;  %s395_s23 = scalar_lea.vmem %s191_s7, 128 }
  0x49   : > { %175 = vst [vmem:[%s171_s17] sm:$0xff] %v174_v2  ;;  %p396_p9 = scmp.ne.s32.totalorder %s191_s7, %s395_s23  ;;  %p668_p11 = scmp.ne.s32.totalorder %s662_s29, 0 }
  0x4a   : > { %s467_s24 = smov [#allocation7]  }
  0x4b   : > { %p397_p13 = pnand %p396_p9, %p668_p11  ;;  %s399_s25 = sshll.u32 %s467_s24, 4  ;;  %s400_s25 = int_to_ptr.vmem [resolvable:$false] %s399_s25 }
  0x4c   : > { %s401_s26 = scalar_lea.vmem %s400_s25, 256  ;;  %p402_p1 = scmp.lt.s32.totalorder %s191_s7, %s400_s25 }
  0x4d   : > { %p398_p10 = pneg %p397_p13  ;;  %p403_p2 = scmp.lt.s32.totalorder %s401_s26, %s395_s23 }
  0x4f   : > { %p404_p0 = por %p403_p2, %p402_p1 }
  0x51   : > { %p405_p3 = pnand %p404_p0, %p398_p10 }
  0x53   : > { %408 = shalt.err (!%p405_p3)
}
  0x54   : > { %s409_s13 = scalar_lea.hbm %s188_s15, 128  ;;  %s413_s3 = scalar_lea.hbm %s651_s2, 256 }
  0x55   : > { %p410_p12 = scmp.ne.s32.totalorder %s188_s15, %s409_s13  ;;  %p414_p6 = scmp.lt.s32.totalorder %s188_s15, %s651_s2 }
  0x56   : > { %p415_p4 = scmp.lt.s32.totalorder %s413_s3, %s409_s13 }
  0x57   : > { %p411_p5 = pnand %p410_p12, %p668_p11 }
  0x58   : > { %p416_p8 = por %p415_p4, %p414_p6 }
  0x59   : > { %p412_p7 = pneg %p411_p5 }
  0x5b   : > { %p417_p9 = pnand %p416_p8, %p412_p7 }
  0x5d   : > { %420 = shalt.err (!%p417_p9)
}
  0x5e   : > { %290 = dma.vmem_to_hbm [thread:$0]  (%p668_p11), %s191_s7, 128, %s188_s15, %s177_s22  }
  0x5f PF: > { %s202_s6 = sand.u32 1, %s451_s9   ;;  %p669_p13 = scmp.ne.s32.totalorder %s657_s16, 0 }
  0x60   : > { %p670_p10 = scmp.ge.s32.totalorder %s463_s12, 2  ;;  %s203_s8 = scalar_lea.sflag [#allocation4], %s202_s6 }
  0x62   : > { %p301_p1 = pnand %p670_p10, %p669_p13 }
  0x64   : > { %p302_p2 = pneg %p301_p1 }
  0x66   : > { %446 = dma.done.wait (%p302_p2), %s203_s8, 128  }
  0x67   : > { %448 = vsyncadd (%p302_p2), %s203_s8, 4294967168  ;;  %p16_p0 = scmp.ge.s32.totalorder %s531_s20, 4   ;;  %s671_s9 = smov %s455_s10 }
  0x68   : > { %s672_s10 = smov %s459_s11  ;;  %s673_s11 = smov %s558_s28 }
  0x69   : > { %s674_s12 = smov %s531_s20  ;;  %18 = sbr.rel (!%p16_p0) target bundleno = 6 (0x6), region = 77 }
  0x6e   :  { %208 = vsyncpa [#allocation3], 1 }
  0x6f   :  { %210 = vsyncpa [#allocation3 + $0x1], 1 }
  0x70   :  { %211 = vsyncpa [#allocation6], 1 }
  0x71   :  { %212 = vsyncpa [#allocation4], 1 }
  0x72   :  { %214 = vsyncpa [#allocation4 + $0x1], 1 }

// kernel: tpu_custom_call.1
= control target key start
LH: loop header
LB: loop body
LE: loop exit
PB: predicated region body
PF: predicated region fallthrough
CT: control target
= control target key end

     0   :  { %vm45_vm0 = vcmask 130048   ;;  %s203_s0 = inlined_call_operand.vmem [shape: bf16[32,16], index: 0, kind: input, shape index: {}]   ;;  %s204_s1 = inlined_call_operand.vmem [shape: bf16[16,32], index: 1, kind: input, shape index: {}]   ;;  %s205_s2 = inlined_call_operand.vmem [shape: f32[1,32], index: 2, kind: input, shape index: {}]   ;;  %s206_s3 = inlined_call_operand.hbm [shape: f32[32,32], index: 3, kind: output, shape index: {}]  }
   0x1   :  { %v140_v0 = vld [vmem:[%s204_s1] sm:$0xff]   ;;  %v142_v2 = vld [vmem:[%s203_s0 + $0x8] sm:$0xff]  }
   0x2   :  { %v141_v1 = vld [vmem:[%s203_s0] sm:$0xff]   ;;  %131 = vmatprep.subr.bf16.mxu0 %v140_v0 }
   0x3   :  { %132 = vmatpush3.bf16.msra.mxu0 %v140_v0  ;;  %133 = vmatprep.mubr.msk.bf16.mxu0 %vm45_vm0, %v141_v1 }
   0x4   :  { %8 = vsyncpa [#allocation3], 0  ;;  %v122_v3 = vld [vmem:[%s205_s2] ss:$0 sm:$0xff]  ;;  %vm101_vm1 = vcmask 261120   ;;  %s165_s1 = smov [#allocation2]  }
   0x5   :  { %s111_s20 = sshll.u32 %s165_s1, 4  ;;  %s112_s20 = int_to_ptr.vmem [resolvable:$true] %s111_s20 }
   0x6   :  { %134 = vmatmul.mubr.msk.bf16.vlgmr.msra.gmra.mxu0 %vm45_vm0, %v142_v2  ;;  %s143_s0 = scalar_lea.vmem %s112_s20, 512  ;;  %p148_p1 = scmp.lt.s32.totalorder %s112_s20, %s112_s20 }
   0x7   :  { %p144_p0 = scmp.ne.s32.totalorder %s112_s20, %s143_s0  ;;  %p149_p2 = scmp.lt.s32.totalorder %s143_s0, %s143_s0 }
   0x9   :  { %p150_p3 = por %p149_p2, %p148_p1 }
   0xb   :  { %p151_p4 = pnand %p150_p3, %p144_p0 }
  0xc6   :  { %v135_v4 = vpop.f32.mrf.mxu0 }
  0xc7   :  { %v95_v5 = vadd.f32 %v135_v4, %v122_v3 }
  0xc8   :  { %v86_v6 = vpop.f32.mrf.mxu0 }
  0xc9   :  { %104 = vst.msk [vmem:[#allocation2 + $0x10] sm:$0xff] %vm101_vm1, %v95_v5  ;;  %v87_v7 = vadd.f32 %v122_v3, %v86_v6 }
  0xca   :  { %v136_v8 = vpop.f32.mrf.mxu0 }
  0xcb   :  { %102 = vst.msk [vmem:[#allocation2] sm:$0xff] %vm101_vm1, %v87_v7  ;;  %v98_v9 = vadd.f32 %v136_v8, %v122_v3 }
  0xcc   :  { %v89_v10 = vpop.f32.mrf.mxu0 }
  0xcd   :  { %105 = vst.msk [vmem:[#allocation2 + $0x18] sm:$0xff] %vm101_vm1, %v98_v9  ;;  %v90_v11 = vadd.f32 %v122_v3, %v89_v10 }
  0xcf   :  { %103 = vst.msk [vmem:[#allocation2 + $0x8] sm:$0xff] %vm101_vm1, %v90_v11 }
  0xd0   :  { %154 = shalt.err (!%p151_p4)
}
  0xd1   :  { %s166_s2 = smov 128   ;;  %s167_s21 = smov 8  }
  0xd2   :  { %117 = dma.vmem_to_hbm [thread:$0]  %s112_s20, 512, %s206_s3, [#allocation3], %s166_s2, %s166_s2, %s167_s21  }
  0xd3   :  { %163 = dma.done.wait [#allocation3], 512  }
  0xd4   :  { %164 = vsyncadd [#allocation3], 4294966784 }
  0xd5   :  { %121 = vsyncpa [#allocation3], 1 }

</bundles_post_ra>
